<compile_context>
chip_gen: v6e
topology: v6e:2x2x1
jax: 0.10.0
libtpu: 0.0.40
codegen_flags: <defaults>
</compile_context>

<pallas_src>
import jax
import jax.numpy as jnp
from jax.experimental import pallas as pl
from jax.experimental.pallas import tpu as pltpu

# Small shapes consistent with the module structure
# (full model: E=128, C_MID=128, H,W = 64,36 -> HW=2304, O_COLS=6912).
B, E, NH = 2, 32, 4
HEAD_DIM = E // NH
C_MID = 32              # channels produced by `fc` / consumed by the 1x1 conv
O_CH = 3
H, W = 16, 32
HW = H * W
O_COLS = O_CH * HW      # fused output columns, ordered (o, hw)

# Output-column tile width (lane axis). Must be a multiple of 128.
# Full model: O_COLS = 6912; TS_COL = 3456 gives 2 even tiles for v7x's 2 TensorCores
# (fused weight is only ~1.7 MiB bf16, so VMEM is a non-issue on v5e/v6e/v7x).
TS_COL = 768
N_TILES = O_COLS // TS_COL
assert O_COLS % TS_COL == 0 and TS_COL % 128 == 0, (O_COLS, TS_COL)


# --------------------------- the single fused decoder kernel ---------------------------
def decoder_kernel(z_ref, wvoT_ref, bvo_ref, w1T_ref, b1_ref, w2T_ref, b2_ref,
                   wfT_ref, bf_ref, out_ref):
    f32 = jnp.float32
    # Attention (folded): seq_len == 1 => softmax over the single key position == 1, so
    # attn_out = z @ (Wo@Wv)^T + (Wo@bv + bo).  Recomputed per tile (~0.1 MFLOP on
    # resident KB-scale weights) so every grid step is fully independent ("parallel").
    attn = jnp.dot(z_ref[...], wvoT_ref[...], preferred_element_type=f32) + bvo_ref[...]
    # FFN: Linear -> ReLU -> Linear
    h = jnp.maximum(
        jnp.dot(attn, w1T_ref[...], preferred_element_type=f32) + b1_ref[...], 0.0)
    x2 = jnp.dot(h, w2T_ref[...], preferred_element_type=f32) + b2_ref[...]
    # Fused fc + 1x1 conv: ONE bf16 dot with f32 accumulation, bias, sigmoid,
    # and ONE lane-dense (B, TS_COL) store.  No in-kernel reshape/relayout.
    y = jnp.dot(x2.astype(jnp.bfloat16), wfT_ref[...],
                preferred_element_type=f32) + bf_ref[...]
    out_ref[...] = jax.nn.sigmoid(y)


# ---------------------- one-time parameter folding (NOT per call) ----------------------
def prepare_params(params):
    (wq, wk, wv, bq, bk, bv, wo, bo, w1, b1, w2, b2, wfc, bfc, wconv, bconv) = params
    hp = jax.lax.Precision.HIGHEST
    row = lambda v: v.reshape(1, -1)
    # Attention fold (valid only because seq_len == 1; q/k/score path is mathematically dead).
    wvoT = jnp.dot(wv.T, wo.T, precision=hp)                               # (E, E)
    bvo = row(jnp.dot(wo, bv, precision=hp) + bo)                          # (1, E)
    # fc + 1x1 conv fold -> fused weight streamed in bf16 (f32 MXU accumulation in-kernel).
    wc = wconv.reshape(O_CH, C_MID)
    wfusedT = (jnp.einsum('oc,che->eoh', wc, wfc.reshape(C_MID, HW, E), precision=hp)
               .reshape(E, O_COLS).astype(jnp.bfloat16))                   # (E, O_CH*HW)
    bfused = (jnp.einsum('oc,ch->oh', wc, bfc.reshape(C_MID, HW), precision=hp)
              + bconv[:, None]).reshape(1, O_COLS)                         # (1, O_CH*HW) f32
    return (wvoT, bvo, w1.T, row(b1), w2.T, row(b2), wfusedT, bfused)


# ------------------------------------ forward pass -------------------------------------
@jax.jit
def simple_attention_decoder(z, folded):
    wvoT, bvo, w1T, b1, w2T, b2, wfT, bf = folded
    assert z.ndim == 2 and z.shape == (B, E)      # module does z.unsqueeze(0) -> seq_len == 1

    const = lambda shape: pl.BlockSpec(shape, lambda i: (0, 0))   # resident full block

    out_flat = pl.pallas_call(
        decoder_kernel,
        out_shape=jax.ShapeDtypeStruct((B, O_COLS), jnp.float32),
        grid=(N_TILES,),
        in_specs=[
            const((B, E)),                                     # z (resident)
            const((E, E)), const((1, E)),                      # folded attention weight / bias
            const((E, 2 * E)), const((1, 2 * E)),              # ffn[0]
            const((2 * E, E)), const((1, E)),                  # ffn[2]
            pl.BlockSpec((E, TS_COL), lambda i: (0, i)),       # fused fc+conv weight (bf16 stream)
            pl.BlockSpec((1, TS_COL), lambda i: (0, i)),       # fused bias (stream)
        ],
        out_specs=pl.BlockSpec((B, TS_COL), lambda i: (0, i)),
        compiler_params=pltpu.CompilerParams(
            # Independent column tiles: lets v7x's 2 TensorCores split the grid.
            # Post-fold VMEM use is < 2 MiB, so no vmem_limit_bytes bump is needed.
            dimension_semantics=("parallel",),
        ),
    )(z, wvoT, bvo, w1T, b1, w2T, b2, wfT, bf)

    return out_flat.reshape(B, O_CH, H, W)        # PyTorch NCHW


# ------------------------------ params + pure-JAX reference ----------------------------
def init_params(key):
    ks = jax.random.split(key, 12)
    n = lambda k, shape: 0.1 * jax.random.normal(k, shape, jnp.float32)
    in_proj_w = n(ks[0], (3 * E, E))                          # PyTorch MHA in_proj_weight
    in_proj_b = n(ks[1], (3 * E,))
    wq, wk, wv = in_proj_w[:E], in_proj_w[E:2 * E], in_proj_w[2 * E:]
    bq, bk, bv = in_proj_b[:E], in_proj_b[E:2 * E], in_proj_b[2 * E:]
    wo, bo = n(ks[2], (E, E)), n(ks[3], (E,))                 # out_proj
    w1, b1 = n(ks[4], (2 * E, E)), n(ks[5], (2 * E,))         # ffn[0]
    w2, b2 = n(ks[6], (E, 2 * E)), n(ks[7], (E,))             # ffn[2]
    wfc, bfc = n(ks[8], (C_MID * HW, E)), n(ks[9], (C_MID * HW,))       # fc
    wconv, bconv = n(ks[10], (O_CH, C_MID, 1, 1)), n(ks[11], (O_CH,))   # final_conv (1x1)
    return (wq, wk, wv, bq, bk, bv, wo, bo, w1, b1, w2, b2, wfc, bfc, wconv, bconv)


def reference(z, params):
    (wq, wk, wv, bq, bk, bv, wo, bo, w1, b1, w2, b2, wfc, bfc, wconv, bconv) = params
    hp = jax.lax.Precision.HIGHEST
    dot = lambda a, b: jnp.dot(a, b, precision=hp)
    # Faithful eval-mode multi-head attention with seq_len == 1.
    q = dot(z, wq.T) + bq
    k = dot(z, wk.T) + bk
    v = dot(z, wv.T) + bv
    qh, kh, vh = (t.reshape(B, NH, HEAD_DIM) for t in (q, k, v))
    scores = jnp.einsum('bhd,bhd->bh', qh, kh, precision=hp) / jnp.sqrt(HEAD_DIM)
    weights = jax.nn.softmax(scores[..., None], axis=-1)      # softmax over 1 key -> all ones
    attn = dot((weights * vh).reshape(B, E), wo.T) + bo
    h = jnp.maximum(dot(attn, w1.T) + b1, 0.0)
    x2 = dot(h, w2.T) + b2
    y = (dot(x2, wfc.T) + bfc).reshape(B, C_MID, H, W)
    o = jnp.einsum('oc,bchw->bohw', wconv.reshape(O_CH, C_MID), y, precision=hp)
    o = o + bconv[None, :, None, None]
    return jax.nn.sigmoid(o)


if __name__ == "__main__":
    key = jax.random.PRNGKey(0)
    kz, kp = jax.random.split(key)
    z = jax.random.normal(kz, (B, E), jnp.float32)            # module input (batch, embed_dim)
    params = init_params(kp)
    folded = prepare_params(params)                           # one-time fold, outside hot path

    out = jax.block_until_ready(simple_attention_decoder(z, folded))
    ref = reference(z, params)

    assert out.shape == (B, O_CH, H, W), out.shape
    assert bool(jnp.all(jnp.isfinite(out)))
    assert bool(jnp.allclose(out, ref, atol=5e-3, rtol=5e-3))
    print("KERNEL_OK")
</pallas_src>

<mosaic_0001>
module attributes {stable_mosaic.version = 11 : i64} {
  func.func @decoder_kernel(%arg0: i32, %arg1: memref<2x32xf32, #tpu.memory_space<vmem>>, %arg2: memref<32x32xf32, #tpu.memory_space<vmem>>, %arg3: memref<1x32xf32, #tpu.memory_space<vmem>>, %arg4: memref<32x64xf32, #tpu.memory_space<vmem>>, %arg5: memref<1x64xf32, #tpu.memory_space<vmem>>, %arg6: memref<64x32xf32, #tpu.memory_space<vmem>>, %arg7: memref<1x32xf32, #tpu.memory_space<vmem>>, %arg8: memref<32x768xbf16, #tpu.memory_space<vmem>>, %arg9: memref<1x768xf32, #tpu.memory_space<vmem>>, %arg10: memref<2x768xf32, #tpu.memory_space<vmem>>) attributes {dimension_semantics = [#tpu.dimension_semantics<parallel>], iteration_bounds = array<i64: 2>, scalar_prefetch = 0 : i64, scratch_operands = 0 : i64, tpu.core_type = #tpu.core_type<tc>, window_params = [{pipeline_mode = #tpu.pipeline_mode<synchronous>, transform_indices = @transform_0, window_bounds = array<i64: 2, 32>}, {pipeline_mode = #tpu.pipeline_mode<synchronous>, transform_indices = @transform_1, window_bounds = array<i64: 32, 32>}, {pipeline_mode = #tpu.pipeline_mode<synchronous>, transform_indices = @transform_2, window_bounds = array<i64: 1, 32>}, {pipeline_mode = #tpu.pipeline_mode<synchronous>, transform_indices = @transform_3, window_bounds = array<i64: 32, 64>}, {pipeline_mode = #tpu.pipeline_mode<synchronous>, transform_indices = @transform_4, window_bounds = array<i64: 1, 64>}, {pipeline_mode = #tpu.pipeline_mode<synchronous>, transform_indices = @transform_5, window_bounds = array<i64: 64, 32>}, {pipeline_mode = #tpu.pipeline_mode<synchronous>, transform_indices = @transform_6, window_bounds = array<i64: 1, 32>}, {transform_indices = @transform_7, window_bounds = array<i64: 32, 768>}, {transform_indices = @transform_8, window_bounds = array<i64: 1, 768>}, {transform_indices = @transform_9, window_bounds = array<i64: 2, 768>}]} {
    %c0 = arith.constant 0 : index
    %c0_0 = arith.constant 0 : index
    %0 = vector.load %arg1[%c0, %c0_0] : memref<2x32xf32, #tpu.memory_space<vmem>>, vector<2x32xf32>
    %c0_1 = arith.constant 0 : index
    %c0_2 = arith.constant 0 : index
    %1 = vector.load %arg2[%c0_1, %c0_2] : memref<32x32xf32, #tpu.memory_space<vmem>>, vector<32x32xf32>
    %cst = arith.constant dense<0.000000e+00> : vector<2x32xf32>
    %2 = tpu.matmul %0, %1, %cst {dimension_numbers = #tpu.dot_dimension_numbers<[1], [0], [0], [1], [0, 0, 1, 1], [], []>} : vector<2x32xf32>, vector<32x32xf32>, vector<2x32xf32> -> vector<2x32xf32>
    %c0_3 = arith.constant 0 : index
    %c0_4 = arith.constant 0 : index
    %3 = vector.load %arg3[%c0_3, %c0_4] : memref<1x32xf32, #tpu.memory_space<vmem>>, vector<1x32xf32>
    %4 = vector.broadcast %3 : vector<1x32xf32> to vector<2x32xf32>
    %5 = arith.addf %2, %4 : vector<2x32xf32>
    %c0_5 = arith.constant 0 : index
    %c0_6 = arith.constant 0 : index
    %6 = vector.load %arg4[%c0_5, %c0_6] : memref<32x64xf32, #tpu.memory_space<vmem>>, vector<32x64xf32>
    %cst_7 = arith.constant dense<0.000000e+00> : vector<2x64xf32>
    %7 = tpu.matmul %5, %6, %cst_7 {dimension_numbers = #tpu.dot_dimension_numbers<[1], [0], [0], [1], [0, 0, 1, 1], [], []>} : vector<2x32xf32>, vector<32x64xf32>, vector<2x64xf32> -> vector<2x64xf32>
    %c0_8 = arith.constant 0 : index
    %c0_9 = arith.constant 0 : index
    %8 = vector.load %arg5[%c0_8, %c0_9] : memref<1x64xf32, #tpu.memory_space<vmem>>, vector<1x64xf32>
    %9 = vector.broadcast %8 : vector<1x64xf32> to vector<2x64xf32>
    %10 = arith.addf %7, %9 : vector<2x64xf32>
    %cst_10 = arith.constant 0.000000e+00 : f32
    %11 = vector.broadcast %cst_10 : f32 to vector<2x64xf32>
    %12 = arith.maximumf %10, %11 : vector<2x64xf32>
    %c0_11 = arith.constant 0 : index
    %c0_12 = arith.constant 0 : index
    %13 = vector.load %arg6[%c0_11, %c0_12] : memref<64x32xf32, #tpu.memory_space<vmem>>, vector<64x32xf32>
    %cst_13 = arith.constant dense<0.000000e+00> : vector<2x32xf32>
    %14 = tpu.matmul %12, %13, %cst_13 {dimension_numbers = #tpu.dot_dimension_numbers<[1], [0], [0], [1], [0, 0, 1, 1], [], []>} : vector<2x64xf32>, vector<64x32xf32>, vector<2x32xf32> -> vector<2x32xf32>
    %c0_14 = arith.constant 0 : index
    %c0_15 = arith.constant 0 : index
    %15 = vector.load %arg7[%c0_14, %c0_15] : memref<1x32xf32, #tpu.memory_space<vmem>>, vector<1x32xf32>
    %16 = vector.broadcast %15 : vector<1x32xf32> to vector<2x32xf32>
    %17 = arith.addf %14, %16 : vector<2x32xf32>
    %18 = arith.truncf %17 : vector<2x32xf32> to vector<2x32xbf16>
    %c0_16 = arith.constant 0 : index
    %c0_17 = arith.constant 0 : index
    %19 = vector.load %arg8[%c0_16, %c0_17] : memref<32x768xbf16, #tpu.memory_space<vmem>>, vector<32x768xbf16>
    %cst_18 = arith.constant dense<0.000000e+00> : vector<2x768xf32>
    %20 = tpu.matmul %18, %19, %cst_18 {dimension_numbers = #tpu.dot_dimension_numbers<[1], [0], [0], [1], [0, 0, 1, 1], [], []>} : vector<2x32xbf16>, vector<32x768xbf16>, vector<2x768xf32> -> vector<2x768xf32>
    %c0_19 = arith.constant 0 : index
    %c0_20 = arith.constant 0 : index
    %21 = vector.load %arg9[%c0_19, %c0_20] : memref<1x768xf32, #tpu.memory_space<vmem>>, vector<1x768xf32>
    %22 = vector.broadcast %21 : vector<1x768xf32> to vector<2x768xf32>
    %23 = arith.addf %20, %22 : vector<2x768xf32>
    %24 = arith.negf %23 : vector<2x768xf32>
    %25 = math.exp %24 : vector<2x768xf32>
    %cst_21 = arith.constant 1.000000e+00 : f32
    %26 = vector.broadcast %cst_21 : f32 to vector<2x768xf32>
    %27 = arith.addf %26, %25 : vector<2x768xf32>
    %28 = arith.divf %26, %27 : vector<2x768xf32>
    %c0_22 = arith.constant 0 : index
    %c0_23 = arith.constant 0 : index
    %29 = vector.load %arg10[%c0_22, %c0_23] : memref<2x768xf32, #tpu.memory_space<vmem>>, vector<2x768xf32>
    tpu.vector_store %arg10[%c0_22, %c0_23], %28 {strides = array<i32>} : memref<2x768xf32, #tpu.memory_space<vmem>>, vector<2x768xf32>,
    return
  }
  func.func @transform_0(%arg0: i32) -> (i32, i32) {
    %c0_i32 = arith.constant 0 : i32
    %c0_i32_0 = arith.constant 0 : i32
    %c0_i32_1 = arith.constant 0 : i32
    return %c0_i32, %c0_i32_0 : i32, i32
  }
  func.func @transform_1(%arg0: i32) -> (i32, i32) {
    %c0_i32 = arith.constant 0 : i32
    %c0_i32_0 = arith.constant 0 : i32
    %c0_i32_1 = arith.constant 0 : i32
    return %c0_i32, %c0_i32_0 : i32, i32
  }
  func.func @transform_2(%arg0: i32) -> (i32, i32) {
    %c0_i32 = arith.constant 0 : i32
    %c0_i32_0 = arith.constant 0 : i32
    %c0_i32_1 = arith.constant 0 : i32
    return %c0_i32, %c0_i32_0 : i32, i32
  }
  func.func @transform_3(%arg0: i32) -> (i32, i32) {
    %c0_i32 = arith.constant 0 : i32
    %c0_i32_0 = arith.constant 0 : i32
    %c0_i32_1 = arith.constant 0 : i32
    return %c0_i32, %c0_i32_0 : i32, i32
  }
  func.func @transform_4(%arg0: i32) -> (i32, i32) {
    %c0_i32 = arith.constant 0 : i32
    %c0_i32_0 = arith.constant 0 : i32
    %c0_i32_1 = arith.constant 0 : i32
    return %c0_i32, %c0_i32_0 : i32, i32
  }
  func.func @transform_5(%arg0: i32) -> (i32, i32) {
    %c0_i32 = arith.constant 0 : i32
    %c0_i32_0 = arith.constant 0 : i32
    %c0_i32_1 = arith.constant 0 : i32
    return %c0_i32, %c0_i32_0 : i32, i32
  }
  func.func @transform_6(%arg0: i32) -> (i32, i32) {
    %c0_i32 = arith.constant 0 : i32
    %c0_i32_0 = arith.constant 0 : i32
    %c0_i32_1 = arith.constant 0 : i32
    return %c0_i32, %c0_i32_0 : i32, i32
  }
  func.func @transform_7(%arg0: i32) -> (i32, i32) {
    %c0_i32 = arith.constant 0 : i32
    %c0_i32_0 = arith.constant 0 : i32
    return %c0_i32, %arg0 : i32, i32
  }
  func.func @transform_8(%arg0: i32) -> (i32, i32) {
    %c0_i32 = arith.constant 0 : i32
    %c0_i32_0 = arith.constant 0 : i32
    return %c0_i32, %arg0 : i32, i32
  }
  func.func @transform_9(%arg0: i32) -> (i32, i32) {
    %c0_i32 = arith.constant 0 : i32
    %c0_i32_0 = arith.constant 0 : i32
    return %c0_i32, %arg0 : i32, i32
  }
}

</mosaic_0001>

<bundles_post_ra>
// kernel: simple_attention_decoder.1
= control target key start
LH: loop header
LB: loop body
LE: loop exit
PB: predicated region body
PF: predicated region fallthrough
CT: control target
= control target key end

     0   :  { %14 = vsyncpa [#allocation3], 0  ;;  %s1519_s0 = inlined_call_operand.vmem [shape: f32[2,32], index: 0, kind: input, shape index: {}]   ;;  %s1520_s1 = inlined_call_operand.vmem [shape: f32[32,32], index: 1, kind: input, shape index: {}]   ;;  %s1521_s2 = inlined_call_operand.vmem [shape: f32[1,32], index: 2, kind: input, shape index: {}]   ;;  %s1522_s3 = inlined_call_operand.vmem [shape: f32[32,64], index: 3, kind: input, shape index: {}]   ;;  %s1523_s4 = inlined_call_operand.vmem [shape: f32[1,64], index: 4, kind: input, shape index: {}]   ;;  %s1524_s5 = inlined_call_operand.vmem [shape: f32[64,32], index: 5, kind: input, shape index: {}]   ;;  %s1525_s6 = inlined_call_operand.vmem [shape: f32[1,32], index: 6, kind: input, shape index: {}]   ;;  %s1526_s7 = inlined_call_operand.hbm [shape: bf16[32,1536], index: 7, kind: input, shape index: {}]   ;;  %s1527_s8 = inlined_call_operand.vmem [shape: f32[1,1536], index: 8, kind: input, shape index: {}]   ;;  %s1528_s9 = inlined_call_operand.vmem [shape: f32[2,1536], index: 9, kind: output, shape index: {}]  }
   0x1   :  { %16 = vsyncpa [#allocation3 + $0x1], 0  ;;  %s1323_s30 = smov 0   ;;  %s1325_s10 = smov 0  }
   0x2   :  { %s1327_s11 = smov 0   ;;  %s1329_s12 = smov 0  }
   0x3 LB: > { %s1013_s13 = sadd.s32 4294967295, %s1263_s12   ;;  %s1343_s14 = sadd.s32 1, %s1263_s12   ;;  %s1263_s12 = sphi %s1329_s12, %s1536_s12   ;;  %s1259_s11 = sphi %s1327_s11, %s1535_s11   ;;  %s1255_s10 = sphi %s1325_s10, %s1534_s10   ;;  %s1251_s30 = sphi %s1323_s30, %s1533_s30  }
   0x4   : > { %s173_s15 = ssub.s32 %s1263_s12, %s1343_s14  ;;  %s176_s16 = sadd.s32 1, %s1259_s11 }
   0x5   : > { %p174_p0 = scmp.eq.s32.totalorder %s173_s15, 0  ;;  %p183_p1 = scmp.ne.s32.totalorder %s1259_s11, %s1255_s10 }
   0x6   : > { %p184_p2 = scmp.eq.s32.totalorder %s1263_s12, 0  ;;  %p189_p3 = scmp.ne.s32.totalorder %s1255_s10, %s1251_s30 }
   0x7   : > { %s1353_s17 = scalar_select %p174_p0, %s1259_s11, %s176_s16  }
   0x8   : > { %p185_p4 = por %p184_p2, %p183_p1  ;;  %p190_p5 = scmp.eq.s32.totalorder %s1013_s13, 0 }
   0x9   : > { %p1119_p6 = scmp.lt.s32.totalorder %s1263_s12, 2  ;;  %s286_s19 = sand.u32 1, %s1259_s11  }
   0xa   : > { %p1358_p7 = por %p190_p5, %p189_p3  ;;  %s1111_s20 = smul.u32 96, %s286_s19 }
   0xb   : > { %s1050_s21 = smul.u32 384, %s1263_s12  ;;  %p1364_p8 = pnand %p1119_p6, %p185_p4 }
   0xc   : > { %s1530_s18 = scalar_select %p1358_p7, 1, 0 }
   0xd   : > { %s1371_s25 = scalar_lea.hbm %s1526_s7, %s1050_s21  ;;  %s290_s26 = scalar_lea.vmem [#allocation2], %s1111_s20 }
   0xe   : > { %s297_s27 = sshll.u32 %s290_s26, 4  ;;  %s1375_s28 = scalar_lea.sflag [#allocation3], %s286_s19  ;;  %s1373_s27 = int_to_ptr.vmem [resolvable:$true] %s297_s27 }
   0xf   : > { %s1201_s29 = scalar_lea.hbm %s1371_s25, 1536  ;;  %p1203_p10 = pneg %p1364_p8 }
  0x10   : > { %p1202_p9 = scmp.ne.s32.totalorder %s1371_s25, %s1201_s29  ;;  %s1206_s16 = scalar_lea.hbm %s1526_s7, 3072 }
  0x11   : > { %p1207_p13 = scmp.lt.s32.totalorder %s1371_s25, %s1526_s7  ;;  %p1208_p0 = scmp.lt.s32.totalorder %s1206_s16, %s1201_s29 }
  0x12   : > { %p1204_p11 = pnand %p1203_p10, %p1202_p9 }
  0x13   : > { %p1209_p1 = por %p1208_p0, %p1207_p13 }
  0x14   : > { %p1205_p12 = pneg %p1204_p11 }
  0x16   : > { %p1210_p2 = pnand %p1209_p1, %p1205_p12 }
  0x18   : > { %1213 = shalt.err (!%p1210_p2)
}
  0x19   : > { %s1214_s19 = scalar_lea.vmem %s1373_s27, 1536  ;;  %s1265_s20 = smov [#allocation2]  }
  0x1a   : > { %p1215_p3 = scmp.ne.s32.totalorder %s1373_s27, %s1214_s19  ;;  %s1219_s24 = sshll.u32 %s1265_s20, 4  ;;  %s1220_s24 = int_to_ptr.vmem [resolvable:$false] %s1219_s24 }
  0x1b   : > { %s1221_s26 = scalar_lea.vmem %s1220_s24, 3072  ;;  %p1222_p6 = scmp.lt.s32.totalorder %s1373_s27, %s1220_s24 }
  0x1c   : > { %p1217_p4 = pnand %p1215_p3, %p1203_p10  ;;  %p1223_p9 = scmp.lt.s32.totalorder %s1221_s26, %s1214_s19 }
  0x1e   : > { %p1218_p5 = pneg %p1217_p4  ;;  %p1224_p11 = por %p1223_p9, %p1222_p6 }
  0x20   : > { %p1225_p7 = pnand %p1224_p11, %p1218_p5 }
  0x22   : > { %1228 = shalt.err (!%p1225_p7)
}
  0x23   : > { %s1266_s29 = smov 768   ;;  %s1267_s30 = smov 384  }
  0x24   : > { %s1268_s15 = smov 24   ;;  %p1018_p10 = scmp.ge.s32.totalorder %s1263_s12, 1 }
  0x25   : > { %1118 = dma.hbm_to_vmem [thread:$0]  (!%p1364_p8), %s1371_s25, 1536, %s1373_s27, %s1375_s28, %s1266_s29, %s1267_s30, %s1268_s15  }
  0x26   : > { %p313_p12 = scmp.lt.s32.totalorder %s1263_s12, 3 }
  0x28   : > { %p314_p13 = pnand %p1018_p10, %p313_p12 }
  0x29   : > { %s319_s16 = sand.u32 (!%p314_p13), 1, %s1255_s10   ;;  %p1532_p7 = scmp.ne.s32.totalorder (!%p314_p13), %s1530_s18, 0 }
  0x2a   : > { %317 = sbr.rel (%p314_p13) target bundleno = 891 (0x37b), region = 56  ;;  %s320_s23 = scalar_lea.sflag (!%p314_p13), [#allocation3], %s319_s16 }
  0x2b   : > { %s1112_s21 = smul.u32 (!%p314_p13), 96, %s319_s16 }
  0x2d   : > { %s1399_s19 = scalar_lea.vmem (!%p314_p13), [#allocation2], %s1112_s21 }
  0x2f   : > { %1246 = dma.done.wait (%p1532_p7), %s320_s23, 1536  }
  0x30   : > { %1248 = vsyncadd (%p1532_p7), %s320_s23, 4294965760  ;;  %v1269_v0 = vmov 0.0   ;;  %vm1270_vm0 = vmmov 0   ;;  %v379_v1 = vld [vmem:[%s1520_s1 + $0x18] sm:$0xff]  ;;  %v378_v2 = vld [vmem:[%s1520_s1 + $0x10] sm:$0xff]  ;;  %vm387_vm1 = vcmask 261120   ;;  %v650_v45 = vlaneseq }
  0x31   : > { %1070 = vmatprep.subr.mxu0 %v1269_v0  ;;  %1078 = vmatprep.mubr.msk.f32.mxu0 %vm1270_vm0, %v1269_v0  ;;  %v377_v3 = vld [vmem:[%s1520_s1 + $0x8] sm:$0xff]  ;;  %v464_v4 = vld [vmem:[%s1522_s3 + $0x18] sm:$0xff]  ;;  %v376_v5 = vld [vmem:[%s1520_s1] sm:$0xff]  ;;  %vm561_vm2 = vcmask 523264   ;;  %v1271_v36 = vmov 0   ;;  %s363_s21 = smul.u32 6, %s1013_s13 }
  0x32   : > { %1081 = vmatprep.subr.mxu1 %v1269_v0  ;;  %1089 = vmatprep.mubr.msk.f32.mxu1 %vm1270_vm0, %v1269_v0  ;;  %v463_v6 = vld [vmem:[%s1522_s3 + $0x10] sm:$0xff]  ;;  %v375_v7 = vld [vmem:[%s1519_s0] sm:$0x3]  ;;  %v462_v8 = vld [vmem:[%s1522_s3 + $0x8] sm:$0xff]  ;;  %v1489_v46 = vshrl.u32 %v650_v45, 7 }
  0x33   : > { %1071 = vmatpush3.msra.mxu0 %v379_v1  ;;  %1082 = vmatpush3.msra.mxu1 %v464_v4  ;;  %v461_v9 = vld [vmem:[%s1522_s3] sm:$0xff]  ;;  %v553_v10 = vld [vmem:[%s1524_s5 + $0x38] sm:$0xff]  ;;  %v552_v11 = vld [vmem:[%s1524_s5 + $0x30] sm:$0xff]  ;;  %p364_p8 = scmp.lt.s32.totalorder %s363_s21, 11 }
  0x34   : > { %1072 = vmatprep.subr.mxu0 %v1269_v0  ;;  %1083 = vmatprep.subr.mxu1 %v1269_v0  ;;  %v551_v12 = vld [vmem:[%s1524_s5 + $0x28] sm:$0xff]  ;;  %v550_v13 = vld [vmem:[%s1524_s5 + $0x20] sm:$0xff]  ;;  %v549_v14 = vld [vmem:[%s1524_s5 + $0x18] sm:$0xff]  ;;  %v652_v47 = vsub.s32 0, %v1489_v46  ;;  %v668_v48 = vsub.s32 4, %v1489_v46  ;;  %v656_v50 = vsub.s32 1, %v1489_v46 }
  0x35   : > { %1073 = vmatpush3.msra.mxu0 %v378_v2  ;;  %1084 = vmatpush3.msra.mxu1 %v463_v6  ;;  %v1020_v15 = vld [vmem:[%s1521_s2] ss:$0 sm:$0xff]  ;;  %v548_v19 = vld [vmem:[%s1524_s5 + $0x10] sm:$0xff]  ;;  %v547_v20 = vld [vmem:[%s1524_s5 + $0x8] sm:$0xff]  ;;  %s1538_s21 = smov (!%p364_p8, %s363_s21), 11  ;;  %v672_v51 = vsub.s32 5, %v1489_v46 }
  0x36   : > { %1074 = vmatprep.subr.mxu0 %v1269_v0  ;;  %1085 = vmatprep.subr.mxu1 %v1269_v0  ;;  %v546_v21 = vld [vmem:[%s1524_s5] sm:$0xff]  ;;  %v1159_v22 = vld [vmem:[%s1399_s19 + $0x30] ss:$24 sps:$4 sm:$0xff]   ;;  %v1161_v23 = vld [vmem:[%s1399_s19 + $0x34] ss:$24 sps:$4 sm:$0xff]   ;;  %s366_s25 = scalar_lea.vmem %s1527_s8, %s1538_s21  ;;  %v660_v60 = vsub.s32 2, %v1489_v46 }
  0x37   : > { %1075 = vmatpush3.msra.mxu0 %v377_v3  ;;  %1086 = vmatpush3.msra.mxu1 %v462_v8  ;;  %v1164_v24 = vld [vmem:[%s1399_s19 + $0x44] ss:$24 sps:$4 sm:$0xff]   ;;  %v1022_v25 = vld [vmem:[%s1523_s4] ss:$0 sm:$0xff]  ;;  %v1170_v32 = vld [vmem:[%s1399_s19 + $0x14] ss:$24 sps:$4 sm:$0xff]  }
  0x38   : > { %1076 = vmatprep.subr.mxu0 %v1269_v0  ;;  %1087 = vmatprep.subr.mxu1 %v1269_v0  ;;  %v1162_v29 = vld [vmem:[%s1399_s19 + $0x40] ss:$24 sps:$4 sm:$0xff]   ;;  %v1167_v31 = vld [vmem:[%s1399_s19 + $0x4] ss:$24 sps:$4 sm:$0xff]   ;;  %v1168_v34 = vld [vmem:[%s1399_s19 + $0x10] ss:$24 sps:$4 sm:$0xff]  }
  0x39   : > { %1077 = vmatpush3.msra.mxu0 %v376_v5  ;;  %1088 = vmatpush3.msra.mxu1 %v461_v9  ;;  %v1165_v33 = vld [vmem:[%s1399_s19] ss:$24 sps:$4 sm:$0xff]   ;;  %v1173_v35 = vld [vmem:[%s1399_s19 + $0x3c] ss:$24 sps:$4 sm:$0xff]   ;;  %v1176_v43 = vld [vmem:[%s1399_s19 + $0xc] ss:$24 sps:$4 sm:$0xff]  }
  0x3a   : > { %1079 = vmatmul.mubr.msk.f32.vlgmr.msra.gmra.mxu0 %vm387_vm1, %v375_v7  ;;  %1092 = vmatprep.subr.mxu0 %v1269_v0  ;;  %v1024_v37 = vld [vmem:[%s1525_s6] ss:$0 sm:$0xff]  ;;  %v1171_v41 = vld [vmem:[%s1399_s19 + $0x38] ss:$24 sps:$4 sm:$0xff]   ;;  %v664_v2 = vsub.s32 3, %v1489_v46  ;;  %s1019_s12 = sshll.u32 %s1538_s21, 1 }
  0x3b   : > { %1108 = vmatprep.mubr.msk.f32.mxu0 %vm1270_vm0, %v1269_v0  ;;  %1093 = vmatpush3.msra.mxu0 %v553_v10  ;;  %v1174_v44 = vld [vmem:[%s1399_s19 + $0x8] ss:$24 sps:$4 sm:$0xff]   ;;  %s372_s27 = scalar_lea.vmem %s1528_s9, %s1019_s12 }
  0x3c   : > { %1094 = vmatprep.subr.mxu0 %v1269_v0  ;;  %755 = vmatprep.subr.bf16.mxu1 %v1161_v23  ;;  %v648_v49 = vld [vmem:[%s366_s25] sm:$0x3f] }
  0x3d   : > { %1095 = vmatpush3.msra.mxu0 %v552_v11  ;;  %v653_v52 = vrot.slane %v648_v49, %v652_v47  ;;  %v669_v53 = vrot.slane %v648_v49, %v668_v48  ;;  %v657_v54 = vrot.slane %v648_v49, %v656_v50  ;;  %v673_v55 = vrot.slane %v648_v49, %v672_v51 }
  0x3e   : > { %1096 = vmatprep.subr.mxu0 %v1269_v0  ;;  %v661_v8 = vrot.slane %v648_v49, %v660_v60  ;;  %v665_v11 = vrot.slane %v648_v49, %v664_v2 }
  0x3f   : > { %1097 = vmatpush3.msra.mxu0 %v551_v12 }
  0x40   : > { %1098 = vmatprep.subr.mxu0 %v1269_v0 }
  0x41   : > { %1099 = vmatpush3.msra.mxu0 %v550_v13 }
  0x42   : > { %1100 = vmatprep.subr.mxu0 %v1269_v0 }
  0x43   : > { %1101 = vmatpush3.msra.mxu0 %v549_v14 }
  0x44   : > { %1102 = vmatprep.subr.mxu0 %v1269_v0 }
  0x45   : > { %1103 = vmatpush3.msra.mxu0 %v548_v19 }
  0x46   : > { %1104 = vmatprep.subr.mxu0 %v1269_v0 }
  0x47   : > { %1105 = vmatpush3.msra.mxu0 %v547_v20 }
  0x48   : > { %1106 = vmatprep.subr.mxu0 %v1269_v0 }
  0x49   : > { %1107 = vmatpush3.msra.mxu0 %v546_v21 }
  0x4a   : > { %837 = vmatprep.subr.bf16.mxu0 %v1164_v24 }
  0xfa   : > { %v457_v16 = vpop.f32.mrf.mxu0 }
  0xfb   : > { %v458_v17 = vadd.f32 %v1020_v15, %v457_v16 }
  0xfc   : > { %v1080_v18 = vpop.f32.mrf.mxu0 }
  0xfd   : > { %1090 = vmatmul.mubr.msk.f32.vlgmr.msra.gmra.mxu1 %vm387_vm1, %v458_v17 }
  0xfe   : > { %756 = vmatpush1.bf16.msra.mxu1 %v1159_v22  ;;  %775 = vmatprep.mubr.bf16.mxu1 %v1271_v36 }
  0xff   : > { %757 = vmatprep.subr.bf16.mxu1 %v1167_v31 }
 0x102   : > { %758 = vmatpush1.bf16.msra.mxu1 %v1165_v33 }
 0x103   : > { %796 = vmatprep.subr.bf16.mxu1 %v1173_v35 }
 0x1bd   : > { %v541_v26 = vpop.f32.mrf.mxu1 }
 0x1be   : > { %v542_v27 = vadd.f32 %v1022_v25, %v541_v26 }
 0x1bf   : > { %v1091_v28 = vpop.f32.mrf.mxu1 }
 0x1c0   : > { %v545_v30 = vmax.f32 %v542_v27, 0.0 }
 0x1c2   : > { %1109 = vmatmul.mubr.msk.f32.vlgmr.msra.gmra.mxu0 %vm561_vm2, %v545_v30 }
 0x1c3   : > { %838 = vmatpush1.bf16.msra.mxu0 %v1162_v29  ;;  %857 = vmatprep.mubr.bf16.mxu0 %v1271_v36 }
 0x1c4   : > { %839 = vmatprep.subr.bf16.mxu0 %v1170_v32  ;;  %v1272_v32 = vmov 1983009808  }
 0x1c5   : > { %v911_v33 = vunpack.c.l.s4 %v1272_v32 }
 0x1c7   : > { %840 = vmatpush1.bf16.msra.mxu0 %v1168_v34 }
 0x282   : > { %v631_v38 = vpop.f32.mrf.mxu0 }
 0x283   : > { %v632_v39 = vadd.f32 %v1024_v37, %v631_v38  ;;  %v912_v37 = vunpack.c.0.s8 %v911_v33 }
 0x284   : > { %v1110_v40 = vpop.f32.mrf.mxu0 }
 0x285   : > { %v635_v42 = vpack.c.bf16 %v632_v39, %v632_v39 }
 0x287   : > { %1038 = vmatmul.mubr.msk.bf16.vlgmr.msra.gmra.mxu1 %vm387_vm1, %v635_v42  ;;  %1040 = vmatmul.mubr.msk.bf16.vlgmr.msra.gmra.mxu0 %vm387_vm1, %v635_v42 }
 0x288   : > { %797 = vmatpush1.bf16.msra.mxu1 %v1171_v41  ;;  %816 = vmatprep.mubr.bf16.mxu1 %v1271_v36 }
 0x289   : > { %798 = vmatprep.subr.bf16.mxu1 %v1176_v43 }
 0x28c   : > { %799 = vmatpush1.bf16.msra.mxu1 %v1174_v44 }
 0x28f   : > { %1039 = vmatmul.mubr.msk.bf16.vlgmr.msra.gmra.mxu1 %vm387_vm1, %v635_v42  ;;  %v915_v42 = vsub.s32 %v912_v37, %v1489_v46 }
 0x347   : > { %v777_v56 = vpop.f32.mrf.mxu1  ;;  %v859_v57 = vpop.f32.mrf.mxu0 }
 0x348   : > { %v778_v58 = vadd.f32 %v777_v56, %v653_v52  ;;  %v860_v59 = vadd.f32 %v859_v57, %v669_v53 }
 0x349   : > { %v779_v61 = vpop.f32.mrf.mxu1  ;;  %v861_v62 = vpop.f32.mrf.mxu0 }
 0x34a   : > { %v1045_v63 = vmul.f32 -1.442695, %v860_v59  ;;  %v780_v0 = vadd.f32 %v779_v61, %v657_v54  ;;  %v862_v1 = vadd.f32 %v861_v62, %v673_v55  ;;  %v1041_v5 = vmul.f32 -1.442695, %v778_v58 }
 0x34b   : > { %v781_v3 = vpop.f32.mrf.mxu1  ;;  %v863_v4 = vpop.f32.mrf.mxu0 }
 0x34c   : > { %v1042_v6 = vmul.f32 -1.442695, %v780_v0  ;;  %v1046_v7 = vmul.f32 -1.442695, %v862_v1  ;;  %1177 = vpow2.f32 %v1045_v63 }
 0x34d   : > { %v782_v9 = vpop.f32.mrf.mxu1  ;;  %v864_v10 = vpop.f32.mrf.mxu0 }
 0x34e   : > { %1179 = vpow2.f32 %v1042_v6 }
 0x34f   : > { %1181 = vpow2.f32 %v1046_v7  ;;  %v818_v12 = vpop.f32.mrf.mxu1 }
 0x350   : > { %1183 = vpow2.f32 %v1041_v5  ;;  %v819_v13 = vadd.f32 %v818_v12, %v661_v8 }
 0x351   : > { %v820_v14 = vpop.f32.mrf.mxu1 }
 0x352   : > { %v1043_v15 = vmul.f32 -1.442695, %v819_v13  ;;  %v821_v16 = vadd.f32 %v820_v14, %v665_v11 }
 0x353   : > { %v822_v17 = vpop.f32.mrf.mxu1 }
 0x354   : > { %1185 = vpow2.f32 %v1043_v15  ;;  %v1044_v18 = vmul.f32 -1.442695, %v821_v16 }
 0x355   : > { %v823_v19 = vpop.f32.mrf.mxu1 }
 0x356   : > { %1187 = vpow2.f32 %v1044_v18 }
 0x359   : > { %v1178_v20 = vpop.eup %1177 }
 0x35a   : > { %v888_v22 = vadd.f32 1.0, %v1178_v20 }
 0x35b   : > { %v1180_v21 = vpop.eup %1179 }
 0x35c   : > { %v1182_v23 = vpop.eup %1181  ;;  %1189 = vrcp.f32 %v888_v22  ;;  %v885_v26 = vadd.f32 1.0, %v1180_v21 }
 0x35d   : > { %v1184_v24 = vpop.eup %1183  ;;  %v889_v25 = vadd.f32 1.0, %v1182_v23 }
 0x35e   : > { %v884_v27 = vadd.f32 1.0, %v1184_v24 }
 0x35f   : > { %1191 = vrcp.f32 %v889_v25 }
 0x360   : > { %1193 = vrcp.f32 %v885_v26 }
 0x361   : > { %v1186_v28 = vpop.eup %1185  ;;  %1195 = vrcp.f32 %v884_v27 }
 0x362   : > { %v886_v29 = vadd.f32 1.0, %v1186_v28 }
 0x363   : > { %v1188_v30 = vpop.eup %1187 }
 0x364   : > { %v887_v31 = vadd.f32 1.0, %v1188_v30  ;;  %1197 = vrcp.f32 %v886_v29 }
 0x366   : > { %1199 = vrcp.f32 %v887_v31 }
 0x369   : > { %v1190_v34 = vpop.eup %1189 }
 0x36c   : > { %v1192_v35 = vpop.eup %1191 }
 0x36d   : > { %v925_v36 = vcombine.low %v1190_v34, %v1192_v35  ;;  %v1194_v38 = vpop.eup %1193 }
 0x36e   : > { %v1196_v39 = vpop.eup %1195 }
 0x36f   : > { %1047 = vst.sshfl [vmem:[%s372_s27 + $0x8] sm:$0x33 pattern:$0x76325410] %v925_v36  ;;  %v908_v41 = vcombine.low %v1196_v39, %v1194_v38 }
 0x371   : > { %v1198_v40 = vpop.eup %1197  ;;  %v916_v45 = vrot.slane %v908_v41, %v915_v42 }
 0x373   : > { %v1200_v43 = vpop.eup %1199 }
 0x374   : > { %v909_v44 = vcombine.low %v1198_v40, %v1200_v43 }
 0x376   : > { %v923_v47 = vrot.slane %v909_v44, %v915_v42 }
 0x378   : > { %v924_v48 = vcombine.low %v916_v45, %v923_v47 }
 0x37a   : > { %935 = vst [vmem:[%s372_s27] sm:$0xff] %v924_v48 }
 0x37b PF: > { %p19_p0 = scmp.ge.s32.totalorder %s1343_s14, 4   ;;  %s1533_s30 = smov %s1255_s10 }
 0x37c   : > { %s1534_s10 = smov %s1259_s11  ;;  %s1535_s11 = smov %s1353_s17 }
 0x37d   : > { %s1536_s12 = smov %s1343_s14  ;;  %21 = sbr.rel (!%p19_p0) target bundleno = 3 (0x3), region = 99 }
 0x382   :  { %959 = vsyncpa [#allocation3], 1 }
 0x383   :  { %961 = vsyncpa [#allocation3 + $0x1], 1 }

</bundles_post_ra>
